<compile_context>
chip_gen: v6e
topology: v6e:2x2x1
jax: 0.10.0
libtpu: 0.0.40
codegen_flags: <defaults>
</compile_context>

<pallas_src>
import functools

import jax
import jax.numpy as jnp
from jax.experimental import pallas as pl
from jax.experimental.pallas import tpu as pltpu


def _dist_kernel(zs_ref, zt_ref, mom_ref, inter_ref, *,
                 B, C, TB, C_pad, S, T, eps, mask_cols, mask_rows):
    g = pl.program_id(0)
    s = pl.program_id(1)

    # ---- init per-group accumulators on the first inner step -----------------
    @pl.when(s == 0)
    def _init():
        mom_ref[...] = jnp.zeros_like(mom_ref)
        inter_ref[...] = jnp.zeros_like(inter_ref)

    zs = zs_ref[...].astype(jnp.float32)
    zt = zt_ref[...].astype(jnp.float32)
    if T != 1.0:
        inv_T = jnp.float32(1.0 / T)
        zs = zs * inv_T
        zt = zt * inv_T

    inv_C = jnp.float32(1.0 / C)
    if mask_cols:
        # Low-rank (1, C_pad) column mask; sentinel applied after the f32 cast so
        # exp() underflows padded classes to exactly 0.
        col_ok = jax.lax.broadcasted_iota(jnp.int32, (1, C_pad), 1) < C
        neg = jnp.float32(-1e30)
        zs = jnp.where(col_ok, zs, neg)
        zt = jnp.where(col_ok, zt, neg)
        shift = jnp.where(col_ok, inv_C, jnp.float32(0.0))      # (1, C_pad)
    else:
        shift = inv_C                                           # scalar

    # ---- temperature softmax along the class axis ----------------------------
    zs = zs - jnp.max(zs, axis=1, keepdims=True)
    zt = zt - jnp.max(zt, axis=1, keepdims=True)
    es = jnp.exp(zs)
    et = jnp.exp(zt)
    # (TB, 1)-sized exact divides: negligible work, and keeping sum(ps) == 1 to
    # f32 precision keeps the fused 1/C centering valid.
    inv_sum_s = 1.0 / jnp.sum(es, axis=1, keepdims=True)
    inv_sum_t = 1.0 / jnp.sum(et, axis=1, keepdims=True)

    if mask_rows:
        # Fold the batch-padding row mask into the (TB, 1) softmax scale and the
        # broadcast mean shift -> no extra per-element selects on any tile.
        row0 = (g * S + s) * TB
        rm = (jax.lax.broadcasted_iota(jnp.int32, (TB, 1), 0) + row0 < B
              ).astype(jnp.float32)                              # (TB, 1)
        inv_sum_s = inv_sum_s * rm
        inv_sum_t = inv_sum_t * rm
        shift = shift * rm

    ps = es * inv_sum_s
    pt = et * inv_sum_t

    # Fused centering: a softmax row's class-mean is exactly 1/C, so qs/qt serve
    # both the inter (per-row) and intra (per-column) Pearson correlations.
    # Padded classes: ps == 0 and shift == 0 there -> qs == 0.
    # Padded batch rows: ps == 0 and shift == 0 there -> qs == 0.
    qs = ps - shift
    qt = pt - shift

    prod_st = qs * qt
    prod_ss = qs * qs
    prod_tt = qt * qt

    # ---- inter-class: per-row Pearson; row sums offloaded to the MXU ---------
    ones_rhs = jnp.ones((C_pad, 128), jnp.float32)

    def row_sum(x):
        return jnp.dot(x, ones_rhs, preferred_element_type=jnp.float32)[:, 0:1]

    num = row_sum(prod_st)                                       # (TB, 1)
    nrm = jnp.sqrt(row_sum(prod_ss)) * jnp.sqrt(row_sum(prod_tt)) + eps
    # Padded rows: num = 0, nrm = eps -> contribute exactly 0.
    inter_ref[...] += jnp.sum(num / nrm)

    # ---- intra-class: per-column raw moments as (8, C_pad) sublane partials --
    # Summing (TB//8, 8, C_pad) over axis 0 is pure vreg adds (no XLU); the 8->1
    # sublane reduce is deferred to the JAX epilogue.
    def fold8(x):
        return jnp.sum(x.reshape(TB // 8, 8, C_pad), axis=0)

    mom_ref[0, 0] += fold8(qs)
    mom_ref[0, 1] += fold8(qt)
    mom_ref[0, 2] += fold8(prod_st)
    mom_ref[0, 3] += fold8(prod_ss)
    mom_ref[0, 4] += fold8(prod_tt)


def dist_loss(z_s, z_t, *, m=1.0, n=1.0, T=1.0, eps=1e-8, block_rows=None,
              num_parallel=2, vmem_limit_bytes=None):
    """DIST KD loss. z_s, z_t: (B, C) logits (f32 or bf16). Returns scalar f32."""
    assert z_s.shape == z_t.shape and z_s.ndim == 2
    B, C = z_s.shape
    C_pad = ((C + 127) // 128) * 128            # lane-dense class blocks

    try:
        vmem_cap = int(pltpu.get_tpu_info().vmem_capacity_bytes)
    except Exception:
        vmem_cap = 64 * 1024 * 1024             # conservative (v7x) fallback

    itemsize = jnp.dtype(z_s.dtype).itemsize
    if block_rows is None:
        # Footprint: 2 inputs x 2 pipeline buffers (input dtype) + ~8 live f32
        # (TB, C_pad) temporaries + ones RHS + (double-buffered) accumulators.
        budget = int(0.55 * vmem_cap)
        fixed = C_pad * (128 * 4 + 2 * 5 * 8 * 4)
        per_row = C_pad * (2 * 2 * itemsize + 8 * 4)
        tb = (budget - fixed) // per_row
        tb = int(max(8, min(512, (tb // 8) * 8)))
    else:
        tb = int(max(8, (block_rows // 8) * 8))
    tb = min(tb, ((B + 7) // 8) * 8)            # don't over-tile tiny batches

    n_tiles = -(-B // tb)
    G = max(1, min(int(num_parallel), n_tiles))  # leading "parallel" (megacore) axis
    S = -(-n_tiles // G)
    B_pad = G * S * tb

    if (B_pad, C_pad) != (B, C):
        zp_s = jnp.pad(z_s, ((0, B_pad - B), (0, C_pad - C)))
        zp_t = jnp.pad(z_t, ((0, B_pad - B), (0, C_pad - C)))
    else:
        zp_s, zp_t = z_s, z_t

    if vmem_limit_bytes is None:
        vmem_limit_bytes = max(32 * 1024 * 1024, vmem_cap - 4 * 1024 * 1024)

    kernel = functools.partial(
        _dist_kernel, B=B, C=C, TB=tb, C_pad=C_pad, S=S,
        T=float(T), eps=float(eps),
        mask_cols=(C_pad != C), mask_rows=(B_pad != B))

    moments, inter = pl.pallas_call(
        kernel,
        out_shape=(jax.ShapeDtypeStruct((G, 5, 8, C_pad), jnp.float32),
                   jax.ShapeDtypeStruct((G, 1, 1), jnp.float32)),
        grid_spec=pltpu.PrefetchScalarGridSpec(
            num_scalar_prefetch=0,
            grid=(G, S),
            in_specs=[
                pl.BlockSpec((tb, C_pad), lambda g, s: (g * S + s, 0)),
                pl.BlockSpec((tb, C_pad), lambda g, s: (g * S + s, 0)),
            ],
            out_specs=(
                pl.BlockSpec((1, 5, 8, C_pad), lambda g, s: (g, 0, 0, 0)),
                pl.BlockSpec((1, 1, 1), lambda g, s: (g, 0, 0)),
            ),
        ),
        compiler_params=pltpu.CompilerParams(
            dimension_semantics=("parallel", "arbitrary"),
            vmem_limit_bytes=int(vmem_limit_bytes),
        ),
    )(zp_s, zp_t)

    # ---- tiny JAX epilogue: combine per-group partials, finish both Pearsons ----
    mom = jnp.sum(moments, axis=(0, 2))            # (5, C_pad)
    s_s, s_t, s_st, s_ss, s_tt = mom[0], mom[1], mom[2], mom[3], mom[4]
    Bf = jnp.float32(B)
    cov = s_st - s_s * s_t / Bf
    vs = jnp.maximum(s_ss - s_s * s_s / Bf, 0.0)
    vt = jnp.maximum(s_tt - s_t * s_t / Bf, 0.0)
    corr_c = cov / (jnp.sqrt(vs) * jnp.sqrt(vt) + eps)   # padded cols -> 0/eps = 0
    intra_mean = jnp.sum(corr_c) / jnp.float32(C)
    inter_mean = jnp.sum(inter) / Bf
    T2 = jnp.float32(T * T)
    inter_loss = T2 * (1.0 - inter_mean)
    intra_loss = T2 * (1.0 - intra_mean)
    return m * inter_loss + n * intra_loss


def _dist_ref(z_s, z_t, m=1.0, n=1.0, T=1.0, eps=1e-8):
    """Pure-JAX reference mirroring the PyTorch module."""
    y_s = jax.nn.softmax(z_s / T, axis=1)
    y_t = jax.nn.softmax(z_t / T, axis=1)

    def pearson_mean(a, b, axis):
        a = a - a.mean(axis=axis, keepdims=True)
        b = b - b.mean(axis=axis, keepdims=True)
        num = (a * b).sum(axis)
        den = jnp.sqrt((a * a).sum(axis)) * jnp.sqrt((b * b).sum(axis)) + eps
        return (num / den).mean()

    inter = (T ** 2) * (1.0 - pearson_mean(y_s, y_t, 1))
    intra = (T ** 2) * (1.0 - pearson_mean(y_s, y_t, 0))
    return m * inter + n * intra


if __name__ == "__main__":
    key = jax.random.PRNGKey(0)
    k1, k2, k3, k4 = jax.random.split(key, 4)
    m, n, T = 1.0, 1.0, 4.0   # DIST hyperparameters (deterministic, set in-script)

    # Case 1: small toy logits (batch=8, classes=32 -> padded to 128 lanes).
    B, C = 8, 32
    z_s = jax.random.normal(k1, (B, C), dtype=jnp.float32)
    z_t = jax.random.normal(k2, (B, C), dtype=jnp.float32)
    loss = jax.block_until_ready(dist_loss(z_s, z_t, m=m, n=n, T=T))
    ref = _dist_ref(z_s, z_t, m=m, n=n, T=T)
    assert jnp.allclose(loss, ref, atol=1e-4, rtol=1e-4), (loss, ref)

    # Case 2: unaligned shape with multiple batch tiles -> exercises row/column
    # masking, the parallel group axis (G=2) and the streamed moment merge.
    B2, C2 = 20, 200
    z_s2 = jax.random.normal(k3, (B2, C2), dtype=jnp.float32)
    z_t2 = jax.random.normal(k4, (B2, C2), dtype=jnp.float32)
    loss2 = jax.block_until_ready(dist_loss(z_s2, z_t2, m=m, n=n, T=T, block_rows=8))
    ref2 = _dist_ref(z_s2, z_t2, m=m, n=n, T=T)
    assert jnp.allclose(loss2, ref2, atol=1e-4, rtol=1e-4), (loss2, ref2)

    print("KERNEL_OK")
</pallas_src>

<mosaic_0001>
module attributes {stable_mosaic.version = 11 : i64} {
  func.func @_dist_kernel(%arg0: i32, %arg1: i32, %arg2: memref<8x128xf32, #tpu.memory_space<vmem>>, %arg3: memref<8x128xf32, #tpu.memory_space<vmem>>, %arg4: memref<1x5x8x128xf32, #tpu.memory_space<vmem>>, %arg5: memref<1x1x1xf32, #tpu.memory_space<vmem>>) attributes {dimension_semantics = [#tpu.dimension_semantics<parallel>, #tpu.dimension_semantics<arbitrary>], iteration_bounds = array<i64: 1, 1>, scalar_prefetch = 0 : i64, scratch_operands = 0 : i64, tpu.core_type = #tpu.core_type<tc>, window_params = [{transform_indices = @transform_0, window_bounds = array<i64: 8, 128>}, {transform_indices = @transform_1, window_bounds = array<i64: 8, 128>}, {transform_indices = @transform_2, window_bounds = array<i64: 1, 5, 8, 128>}, {transform_indices = @transform_3, window_bounds = array<i64: 1, 1, 1>}]} {
    %c0_i32 = arith.constant 0 : i32
    %0 = arith.cmpi eq, %arg1, %c0_i32 : i32
    %1 = arith.extui %0 : i1 to i32
    %c0_i32_0 = arith.constant 0 : i32
    %2 = arith.cmpi ne, %1, %c0_i32_0 : i32
    scf.if %2 {
      %cst_68 = arith.constant 0.000000e+00 : f32
      %113 = vector.broadcast %cst_68 : f32 to vector<1x5x8x128xf32>
      %c0_69 = arith.constant 0 : index
      %c0_70 = arith.constant 0 : index
      %c0_71 = arith.constant 0 : index
      %c0_72 = arith.constant 0 : index
      %114 = vector.load %arg4[%c0_69, %c0_70, %c0_71, %c0_72] : memref<1x5x8x128xf32, #tpu.memory_space<vmem>>, vector<1x5x8x128xf32>
      tpu.vector_store %arg4[%c0_69, %c0_70, %c0_71, %c0_72], %113 {strides = array<i32>} : memref<1x5x8x128xf32, #tpu.memory_space<vmem>>, vector<1x5x8x128xf32>,
      %cst_73 = arith.constant 0.000000e+00 : f32
      %115 = vector.broadcast %cst_73 : f32 to vector<1x1x1xf32>
      %c0_74 = arith.constant 0 : index
      %c0_75 = arith.constant 0 : index
      %c0_76 = arith.constant 0 : index
      %116 = vector.load %arg5[%c0_74, %c0_75, %c0_76] : memref<1x1x1xf32, #tpu.memory_space<vmem>>, vector<1x1x1xf32>
      tpu.vector_store %arg5[%c0_74, %c0_75, %c0_76], %115 {strides = array<i32>} : memref<1x1x1xf32, #tpu.memory_space<vmem>>, vector<1x1x1xf32>,
    } else {
    }
    %c0 = arith.constant 0 : index
    %c0_1 = arith.constant 0 : index
    %3 = vector.load %arg2[%c0, %c0_1] : memref<8x128xf32, #tpu.memory_space<vmem>>, vector<8x128xf32>
    %c0_2 = arith.constant 0 : index
    %c0_3 = arith.constant 0 : index
    %4 = vector.load %arg3[%c0_2, %c0_3] : memref<8x128xf32, #tpu.memory_space<vmem>>, vector<8x128xf32>
    %cst = arith.constant 2.500000e-01 : f32
    %5 = vector.broadcast %cst : f32 to vector<8x128xf32>
    %6 = arith.mulf %3, %5 : vector<8x128xf32>
    %cst_4 = arith.constant 2.500000e-01 : f32
    %7 = vector.broadcast %cst_4 : f32 to vector<8x128xf32>
    %8 = arith.mulf %4, %7 : vector<8x128xf32>
    %9 = tpu.iota {dimensions = array<i32: 1>} : vector<1x128xi32>
    %c32_i32 = arith.constant 32 : i32
    %10 = vector.broadcast %c32_i32 : i32 to vector<1x128xi32>
    %11 = arith.cmpi slt, %9, %10 : vector<1x128xi32>
    %cst_5 = arith.constant -1.000000e+30 : f32
    %12 = vector.shape_cast %11 : vector<1x128xi1> to vector<1x128xi1>
    %13 = vector.broadcast %12 : vector<1x128xi1> to vector<8x128xi1>
    %14 = vector.broadcast %cst_5 : f32 to vector<8x128xf32>
    %15 = arith.select %13, %6, %14 : vector<8x128xi1>, vector<8x128xf32>
    %cst_6 = arith.constant -1.000000e+30 : f32
    %16 = vector.shape_cast %11 : vector<1x128xi1> to vector<1x128xi1>
    %17 = vector.broadcast %16 : vector<1x128xi1> to vector<8x128xi1>
    %18 = vector.broadcast %cst_6 : f32 to vector<8x128xf32>
    %19 = arith.select %17, %8, %18 : vector<8x128xi1>, vector<8x128xf32>
    %cst_7 = arith.constant 3.125000e-02 : f32
    %cst_8 = arith.constant 0.000000e+00 : f32
    %20 = vector.broadcast %cst_7 : f32 to vector<1x128xf32>
    %21 = vector.broadcast %cst_8 : f32 to vector<1x128xf32>
    %22 = arith.select %11, %20, %21 : vector<1x128xi1>, vector<1x128xf32>
    %cst_9 = arith.constant dense<0xFF800000> : vector<8xf32>
    %23 = vector.multi_reduction <maximumf>, %15, %cst_9 [1] : vector<8x128xf32> to vector<8xf32>
    %24 = vector.shape_cast %23 : vector<8xf32> to vector<8x1xf32>
    %25 = vector.broadcast %24 : vector<8x1xf32> to vector<8x128xf32>
    %26 = arith.subf %15, %25 : vector<8x128xf32>
    %cst_10 = arith.constant dense<0xFF800000> : vector<8xf32>
    %27 = vector.multi_reduction <maximumf>, %19, %cst_10 [1] : vector<8x128xf32> to vector<8xf32>
    %28 = vector.shape_cast %27 : vector<8xf32> to vector<8x1xf32>
    %29 = vector.broadcast %28 : vector<8x1xf32> to vector<8x128xf32>
    %30 = arith.subf %19, %29 : vector<8x128xf32>
    %31 = math.exp %26 : vector<8x128xf32>
    %32 = math.exp %30 : vector<8x128xf32>
    %cst_11 = arith.constant dense<0.000000e+00> : vector<8xf32>
    %33 = vector.multi_reduction <add>, %31, %cst_11 [1] : vector<8x128xf32> to vector<8xf32>
    %34 = vector.shape_cast %33 : vector<8xf32> to vector<8x1xf32>
    %cst_12 = arith.constant 1.000000e+00 : f32
    %35 = vector.broadcast %cst_12 : f32 to vector<8x1xf32>
    %36 = arith.divf %35, %34 : vector<8x1xf32>
    %cst_13 = arith.constant dense<0.000000e+00> : vector<8xf32>
    %37 = vector.multi_reduction <add>, %32, %cst_13 [1] : vector<8x128xf32> to vector<8xf32>
    %38 = vector.shape_cast %37 : vector<8xf32> to vector<8x1xf32>
    %cst_14 = arith.constant 1.000000e+00 : f32
    %39 = vector.broadcast %cst_14 : f32 to vector<8x1xf32>
    %40 = arith.divf %39, %38 : vector<8x1xf32>
    %41 = vector.broadcast %36 : vector<8x1xf32> to vector<8x128xf32>
    %42 = arith.mulf %31, %41 : vector<8x128xf32>
    %43 = vector.broadcast %40 : vector<8x1xf32> to vector<8x128xf32>
    %44 = arith.mulf %32, %43 : vector<8x128xf32>
    %45 = vector.broadcast %22 : vector<1x128xf32> to vector<8x128xf32>
    %46 = arith.subf %42, %45 : vector<8x128xf32>
    %47 = vector.broadcast %22 : vector<1x128xf32> to vector<8x128xf32>
    %48 = arith.subf %44, %47 : vector<8x128xf32>
    %49 = arith.mulf %46, %48 : vector<8x128xf32>
    %50 = arith.mulf %46, %46 : vector<8x128xf32>
    %51 = arith.mulf %48, %48 : vector<8x128xf32>
    %cst_15 = arith.constant 1.000000e+00 : f32
    %52 = vector.broadcast %cst_15 : f32 to vector<128x128xf32>
    %cst_16 = arith.constant dense<0.000000e+00> : vector<8x128xf32>
    %53 = tpu.matmul %49, %52, %cst_16 {dimension_numbers = #tpu.dot_dimension_numbers<[1], [0], [0], [1], [0, 0, 1, 1], [], []>} : vector<8x128xf32>, vector<128x128xf32>, vector<8x128xf32> -> vector<8x128xf32>
    %54 = vector.extract_strided_slice %53 {offsets = [0, 0], sizes = [8, 1], strides = [1, 1]} : vector<8x128xf32> to vector<8x1xf32>
    %cst_17 = arith.constant dense<0.000000e+00> : vector<8x128xf32>
    %55 = tpu.matmul %50, %52, %cst_17 {dimension_numbers = #tpu.dot_dimension_numbers<[1], [0], [0], [1], [0, 0, 1, 1], [], []>} : vector<8x128xf32>, vector<128x128xf32>, vector<8x128xf32> -> vector<8x128xf32>
    %56 = vector.extract_strided_slice %55 {offsets = [0, 0], sizes = [8, 1], strides = [1, 1]} : vector<8x128xf32> to vector<8x1xf32>
    %57 = math.sqrt %56 : vector<8x1xf32>
    %cst_18 = arith.constant dense<0.000000e+00> : vector<8x128xf32>
    %58 = tpu.matmul %51, %52, %cst_18 {dimension_numbers = #tpu.dot_dimension_numbers<[1], [0], [0], [1], [0, 0, 1, 1], [], []>} : vector<8x128xf32>, vector<128x128xf32>, vector<8x128xf32> -> vector<8x128xf32>
    %59 = vector.extract_strided_slice %58 {offsets = [0, 0], sizes = [8, 1], strides = [1, 1]} : vector<8x128xf32> to vector<8x1xf32>
    %60 = math.sqrt %59 : vector<8x1xf32>
    %61 = arith.mulf %57, %60 : vector<8x1xf32>
    %cst_19 = arith.constant 9.99999993E-9 : f32
    %62 = vector.broadcast %cst_19 : f32 to vector<8x1xf32>
    %63 = arith.addf %61, %62 : vector<8x1xf32>
    %c0_20 = arith.constant 0 : index
    %c0_21 = arith.constant 0 : index
    %c0_22 = arith.constant 0 : index
    %64 = vector.load %arg5[%c0_20, %c0_21, %c0_22] : memref<1x1x1xf32, #tpu.memory_space<vmem>>, vector<1x1x1xf32>
    %65 = arith.divf %54, %63 : vector<8x1xf32>
    %66 = vector.shape_cast %65 : vector<8x1xf32> to vector<1x8x1xf32>
    %cst_23 = arith.constant dense<0.000000e+00> : vector<1xf32>
    %67 = vector.multi_reduction <add>, %66, %cst_23 [1, 2] : vector<1x8x1xf32> to vector<1xf32>
    %68 = vector.shape_cast %67 : vector<1xf32> to vector<1x1x1xf32>
    %69 = vector.extract %68[0, 0, 0] : f32 from vector<1x1x1xf32>
    %70 = vector.broadcast %69 : f32 to vector<1x1x1xf32>
    %71 = arith.addf %64, %70 : vector<1x1x1xf32>
    %c0_24 = arith.constant 0 : index
    %c0_25 = arith.constant 0 : index
    %c0_26 = arith.constant 0 : index
    %72 = vector.load %arg5[%c0_24, %c0_25, %c0_26] : memref<1x1x1xf32, #tpu.memory_space<vmem>>, vector<1x1x1xf32>
    tpu.vector_store %arg5[%c0_24, %c0_25, %c0_26], %71 {strides = array<i32>} : memref<1x1x1xf32, #tpu.memory_space<vmem>>, vector<1x1x1xf32>,
    %c0_27 = arith.constant 0 : index
    %c0_28 = arith.constant 0 : index
    %c0_29 = arith.constant 0 : index
    %c0_30 = arith.constant 0 : index
    %73 = vector.load %arg4[%c0_27, %c0_28, %c0_29, %c0_30] : memref<1x5x8x128xf32, #tpu.memory_space<vmem>>, vector<1x1x8x128xf32>
    %74 = vector.shape_cast %73 : vector<1x1x8x128xf32> to vector<8x128xf32>
    %75 = vector.shape_cast %46 : vector<8x128xf32> to vector<1x8x128xf32>
    %cst_31 = arith.constant dense<0.000000e+00> : vector<8x128xf32>
    %76 = vector.multi_reduction <add>, %75, %cst_31 [0] : vector<1x8x128xf32> to vector<8x128xf32>
    %77 = arith.addf %74, %76 : vector<8x128xf32>
    %c0_32 = arith.constant 0 : index
    %c0_33 = arith.constant 0 : index
    %c0_34 = arith.constant 0 : index
    %c0_35 = arith.constant 0 : index
    %78 = vector.load %arg4[%c0_32, %c0_33, %c0_34, %c0_35] : memref<1x5x8x128xf32, #tpu.memory_space<vmem>>, vector<1x1x8x128xf32>
    %79 = vector.shape_cast %78 : vector<1x1x8x128xf32> to vector<8x128xf32>
    %80 = vector.shape_cast %77 : vector<8x128xf32> to vector<1x1x8x128xf32>
    tpu.vector_store %arg4[%c0_32, %c0_33, %c0_34, %c0_35], %80 {strides = array<i32>} : memref<1x5x8x128xf32, #tpu.memory_space<vmem>>, vector<1x1x8x128xf32>,
    %c0_36 = arith.constant 0 : index
    %c1 = arith.constant 1 : index
    %c0_37 = arith.constant 0 : index
    %c0_38 = arith.constant 0 : index
    %81 = vector.load %arg4[%c0_36, %c1, %c0_37, %c0_38] : memref<1x5x8x128xf32, #tpu.memory_space<vmem>>, vector<1x1x8x128xf32>
    %82 = vector.shape_cast %81 : vector<1x1x8x128xf32> to vector<8x128xf32>
    %83 = vector.shape_cast %48 : vector<8x128xf32> to vector<1x8x128xf32>
    %cst_39 = arith.constant dense<0.000000e+00> : vector<8x128xf32>
    %84 = vector.multi_reduction <add>, %83, %cst_39 [0] : vector<1x8x128xf32> to vector<8x128xf32>
    %85 = arith.addf %82, %84 : vector<8x128xf32>
    %c0_40 = arith.constant 0 : index
    %c1_41 = arith.constant 1 : index
    %c0_42 = arith.constant 0 : index
    %c0_43 = arith.constant 0 : index
    %86 = vector.load %arg4[%c0_40, %c1_41, %c0_42, %c0_43] : memref<1x5x8x128xf32, #tpu.memory_space<vmem>>, vector<1x1x8x128xf32>
    %87 = vector.shape_cast %86 : vector<1x1x8x128xf32> to vector<8x128xf32>
    %88 = vector.shape_cast %85 : vector<8x128xf32> to vector<1x1x8x128xf32>
    tpu.vector_store %arg4[%c0_40, %c1_41, %c0_42, %c0_43], %88 {strides = array<i32>} : memref<1x5x8x128xf32, #tpu.memory_space<vmem>>, vector<1x1x8x128xf32>,
    %c0_44 = arith.constant 0 : index
    %c2 = arith.constant 2 : index
    %c0_45 = arith.constant 0 : index
    %c0_46 = arith.constant 0 : index
    %89 = vector.load %arg4[%c0_44, %c2, %c0_45, %c0_46] : memref<1x5x8x128xf32, #tpu.memory_space<vmem>>, vector<1x1x8x128xf32>
    %90 = vector.shape_cast %89 : vector<1x1x8x128xf32> to vector<8x128xf32>
    %91 = vector.shape_cast %49 : vector<8x128xf32> to vector<1x8x128xf32>
    %cst_47 = arith.constant dense<0.000000e+00> : vector<8x128xf32>
    %92 = vector.multi_reduction <add>, %91, %cst_47 [0] : vector<1x8x128xf32> to vector<8x128xf32>
    %93 = arith.addf %90, %92 : vector<8x128xf32>
    %c0_48 = arith.constant 0 : index
    %c2_49 = arith.constant 2 : index
    %c0_50 = arith.constant 0 : index
    %c0_51 = arith.constant 0 : index
    %94 = vector.load %arg4[%c0_48, %c2_49, %c0_50, %c0_51] : memref<1x5x8x128xf32, #tpu.memory_space<vmem>>, vector<1x1x8x128xf32>
    %95 = vector.shape_cast %94 : vector<1x1x8x128xf32> to vector<8x128xf32>
    %96 = vector.shape_cast %93 : vector<8x128xf32> to vector<1x1x8x128xf32>
    tpu.vector_store %arg4[%c0_48, %c2_49, %c0_50, %c0_51], %96 {strides = array<i32>} : memref<1x5x8x128xf32, #tpu.memory_space<vmem>>, vector<1x1x8x128xf32>,
    %c0_52 = arith.constant 0 : index
    %c3 = arith.constant 3 : index
    %c0_53 = arith.constant 0 : index
    %c0_54 = arith.constant 0 : index
    %97 = vector.load %arg4[%c0_52, %c3, %c0_53, %c0_54] : memref<1x5x8x128xf32, #tpu.memory_space<vmem>>, vector<1x1x8x128xf32>
    %98 = vector.shape_cast %97 : vector<1x1x8x128xf32> to vector<8x128xf32>
    %99 = vector.shape_cast %50 : vector<8x128xf32> to vector<1x8x128xf32>
    %cst_55 = arith.constant dense<0.000000e+00> : vector<8x128xf32>
    %100 = vector.multi_reduction <add>, %99, %cst_55 [0] : vector<1x8x128xf32> to vector<8x128xf32>
    %101 = arith.addf %98, %100 : vector<8x128xf32>
    %c0_56 = arith.constant 0 : index
    %c3_57 = arith.constant 3 : index
    %c0_58 = arith.constant 0 : index
    %c0_59 = arith.constant 0 : index
    %102 = vector.load %arg4[%c0_56, %c3_57, %c0_58, %c0_59] : memref<1x5x8x128xf32, #tpu.memory_space<vmem>>, vector<1x1x8x128xf32>
    %103 = vector.shape_cast %102 : vector<1x1x8x128xf32> to vector<8x128xf32>
    %104 = vector.shape_cast %101 : vector<8x128xf32> to vector<1x1x8x128xf32>
    tpu.vector_store %arg4[%c0_56, %c3_57, %c0_58, %c0_59], %104 {strides = array<i32>} : memref<1x5x8x128xf32, #tpu.memory_space<vmem>>, vector<1x1x8x128xf32>,
    %c0_60 = arith.constant 0 : index
    %c4 = arith.constant 4 : index
    %c0_61 = arith.constant 0 : index
    %c0_62 = arith.constant 0 : index
    %105 = vector.load %arg4[%c0_60, %c4, %c0_61, %c0_62] : memref<1x5x8x128xf32, #tpu.memory_space<vmem>>, vector<1x1x8x128xf32>
    %106 = vector.shape_cast %105 : vector<1x1x8x128xf32> to vector<8x128xf32>
    %107 = vector.shape_cast %51 : vector<8x128xf32> to vector<1x8x128xf32>
    %cst_63 = arith.constant dense<0.000000e+00> : vector<8x128xf32>
    %108 = vector.multi_reduction <add>, %107, %cst_63 [0] : vector<1x8x128xf32> to vector<8x128xf32>
    %109 = arith.addf %106, %108 : vector<8x128xf32>
    %c0_64 = arith.constant 0 : index
    %c4_65 = arith.constant 4 : index
    %c0_66 = arith.constant 0 : index
    %c0_67 = arith.constant 0 : index
    %110 = vector.load %arg4[%c0_64, %c4_65, %c0_66, %c0_67] : memref<1x5x8x128xf32, #tpu.memory_space<vmem>>, vector<1x1x8x128xf32>
    %111 = vector.shape_cast %110 : vector<1x1x8x128xf32> to vector<8x128xf32>
    %112 = vector.shape_cast %109 : vector<8x128xf32> to vector<1x1x8x128xf32>
    tpu.vector_store %arg4[%c0_64, %c4_65, %c0_66, %c0_67], %112 {strides = array<i32>} : memref<1x5x8x128xf32, #tpu.memory_space<vmem>>, vector<1x1x8x128xf32>,
    return
  }
  func.func @transform_0(%arg0: i32, %arg1: i32) -> (i32, i32) {
    %c1_i32 = arith.constant 1 : i32
    %0 = arith.muli %arg0, %c1_i32 : i32
    %1 = arith.addi %0, %arg1 : i32
    %c0_i32 = arith.constant 0 : i32
    %c0_i32_0 = arith.constant 0 : i32
    return %1, %c0_i32 : i32, i32
  }
  func.func @transform_1(%arg0: i32, %arg1: i32) -> (i32, i32) {
    %c1_i32 = arith.constant 1 : i32
    %0 = arith.muli %arg0, %c1_i32 : i32
    %1 = arith.addi %0, %arg1 : i32
    %c0_i32 = arith.constant 0 : i32
    %c0_i32_0 = arith.constant 0 : i32
    return %1, %c0_i32 : i32, i32
  }
  func.func @transform_2(%arg0: i32, %arg1: i32) -> (i32, i32, i32, i32) {
    %c0_i32 = arith.constant 0 : i32
    %c0_i32_0 = arith.constant 0 : i32
    %c0_i32_1 = arith.constant 0 : i32
    %c0_i32_2 = arith.constant 0 : i32
    return %arg0, %c0_i32, %c0_i32_0, %c0_i32_1 : i32, i32, i32, i32
  }
  func.func @transform_3(%arg0: i32, %arg1: i32) -> (i32, i32, i32) {
    %c0_i32 = arith.constant 0 : i32
    %c0_i32_0 = arith.constant 0 : i32
    %c0_i32_1 = arith.constant 0 : i32
    return %arg0, %c0_i32, %c0_i32_0 : i32, i32, i32
  }
}

</mosaic_0001>

<bundles_post_ra>
// kernel: tpu_custom_call.1
= control target key start
LH: loop header
LB: loop body
LE: loop exit
PB: predicated region body
PF: predicated region fallthrough
CT: control target
= control target key end

     0   :  { %9 = vsyncpa [#allocation3], 0  ;;  %s828_s0 = inlined_call_operand.hbm [shape: f32[8,128], index: 0, kind: input, shape index: {}]   ;;  %s829_s1 = inlined_call_operand.hbm [shape: f32[8,128], index: 1, kind: input, shape index: {}]   ;;  %s830_s2 = inlined_call_operand.hbm [shape: f32[1,5,8,128], index: 2, kind: output, shape index: {0}]   ;;  %s831_s3 = inlined_call_operand.hbm [shape: f32[1,1,1], index: 3, kind: output, shape index: {1}]  }
   0x1   :  { %10 = vsyncpa [#allocation6], 0 }
   0x2   :  { %11 = vsyncpa [#allocation4], 0 }
   0x3   :  { %12 = vsyncpa [#allocation9], 0  ;;  %s664_s12 = smov [#allocation2]   ;;  %s665_s14 = smov [#allocation5]  }
   0x4   :  { %s22_s13 = sshll.u32 %s664_s12, 4  ;;  %s35_s15 = sshll.u32 %s665_s14, 4  ;;  %s23_s13 = int_to_ptr.vmem [resolvable:$true] %s22_s13  ;;  %s36_s15 = int_to_ptr.vmem [resolvable:$true] %s35_s15 }
   0x5   :  { %s584_s16 = scalar_lea.vmem %s23_s13, 128  ;;  %p589_p1 = scmp.lt.s32.totalorder %s23_s13, %s23_s13 }
   0x6   :  { %p585_p0 = scmp.ne.s32.totalorder %s23_s13, %s584_s16  ;;  %p590_p2 = scmp.lt.s32.totalorder %s584_s16, %s584_s16 }
   0x8   :  { %p591_p3 = por %p590_p2, %p589_p1 }
   0xa   :  { %p592_p4 = pnand %p591_p3, %p585_p0 }
   0xc   :  { %595 = shalt.err (!%p592_p4)
}
   0xd   :  { %25 = dma.hbm_to_vmem [thread:$0]  %s828_s0, 128, %s23_s13, [#allocation3]  }
   0xe   :  { %s604_s19 = scalar_lea.vmem %s36_s15, 128  ;;  %p609_p6 = scmp.lt.s32.totalorder %s36_s15, %s36_s15 }
   0xf   :  { %p605_p5 = scmp.ne.s32.totalorder %s36_s15, %s604_s19  ;;  %p610_p7 = scmp.lt.s32.totalorder %s604_s19, %s604_s19 }
  0x11   :  { %p611_p8 = por %p610_p7, %p609_p6 }
  0x13   :  { %p612_p9 = pnand %p611_p8, %p605_p5 }
  0x15   :  { %615 = shalt.err (!%p612_p9)
}
  0x16   :  { %38 = dma.hbm_to_vmem [thread:$0]  %s829_s1, 128, %s36_s15, [#allocation6]  }
  0x17   :  { %656 = dma.done.wait [#allocation3], 128  }
  0x18   :  { %657 = vsyncadd [#allocation3], 4294967168 }
  0x19   :  { %658 = dma.done.wait [#allocation6], 128  }
  0x1a   :  { %659 = vsyncadd [#allocation6], 4294967168  ;;  %v62_v0 = vlaneseq  ;;  %v666_v1 = vmov 0.0   ;;  %v58_v3 = vld [vmem:[#allocation2] sm:$0xff]  ;;  %v59_v4 = vld [vmem:[#allocation5] sm:$0xff]  ;;  %v667_v9 = vmov 1.0  }
  0x1b   :  { %481 = vmatprep.subr.mxu1 %v666_v1  ;;  %446 = vmatprep.subr.mxu0 %v666_v1  ;;  %v60_v5 = vmul.f32 0.25, %v58_v3  ;;  %v61_v6 = vmul.f32 0.25, %v59_v4  ;;  %vm668_vm1 = vmmov 0   ;;  %vm324_vm6 = vcmask 7168   ;;  %s669_s0 = smov [#allocation7]  }
  0x1c   :  { %v701_v2 = vand.u32 127, %v62_v0  ;;  %482 = vmatpush3.msra.mxu1 %v667_v9  ;;  %447 = vmatpush3.msra.mxu0 %v667_v9  ;;  %vm56_vm7 = vcmask 0   ;;  %s368_s1 = sshll.u32 %s669_s0, 4  ;;  %s369_s1 = int_to_ptr.vmem [resolvable:$true] %s368_s1 }
  0x1d   :  { %483 = vmatprep.subr.mxu1 %v666_v1  ;;  %448 = vmatprep.subr.mxu0 %v666_v1  ;;  %57 = vst.msk [vmem:[#allocation8] sm:$0x1] %vm56_vm7, %v666_v1  ;;  %s616_s22 = scalar_lea.vmem %s369_s1, 640  ;;  %p621_p11 = scmp.lt.s32.totalorder %s369_s1, %s369_s1 }
  0x1e   :  { %vm64_vm0 = vcmp.lt.s32.totalorder %v701_v2, 32  ;;  %484 = vmatpush3.msra.mxu1 %v667_v9  ;;  %449 = vmatpush3.msra.mxu0 %v667_v9  ;;  %p617_p10 = scmp.ne.s32.totalorder %s369_s1, %s616_s22  ;;  %p622_p12 = scmp.lt.s32.totalorder %s616_s22, %s616_s22 }
  0x1f   :  { %v706_v7 = vsel %vm64_vm0, %v60_v5, -1e+30  ;;  %v711_v8 = vsel %vm64_vm0, %v61_v6, -1e+30  ;;  %485 = vmatprep.subr.mxu1 %v666_v1  ;;  %450 = vmatprep.subr.mxu0 %v666_v1  ;;  %v69_v21 = vsel %vm64_vm0, 0.03125, %v666_v1 }
  0x20   :  { %70 = vmax.xlane.f32.xlu0 %v706_v7  ;;  %486 = vmatpush3.msra.mxu1 %v667_v9  ;;  %p623_p13 = por %p622_p12, %p621_p11 }
  0x21   :  { %451 = vmatpush3.msra.mxu0 %v667_v9  ;;  %487 = vmatprep.subr.mxu1 %v666_v1 }
  0x22   :  { %452 = vmatprep.subr.mxu0 %v666_v1  ;;  %488 = vmatpush3.msra.mxu1 %v667_v9  ;;  %p624_p0 = pnand %p623_p13, %p617_p10 }
  0x23   :  { %453 = vmatpush3.msra.mxu0 %v667_v9  ;;  %489 = vmatprep.subr.mxu1 %v666_v1 }
  0x24   :  { %73 = vmax.xlane.f32.xlu0 %v711_v8  ;;  %454 = vmatprep.subr.mxu0 %v666_v1 }
  0x25   :  { %490 = vmatpush3.msra.mxu1 %v667_v9  ;;  %455 = vmatpush3.msra.mxu0 %v667_v9 }
  0x26   :  { %491 = vmatprep.subr.mxu1 %v666_v1  ;;  %456 = vmatprep.subr.mxu0 %v666_v1 }
  0x27   :  { %492 = vmatpush3.msra.mxu1 %v667_v9  ;;  %457 = vmatpush3.msra.mxu0 %v667_v9 }
  0x28   :  { %493 = vmatprep.subr.mxu1 %v666_v1  ;;  %458 = vmatprep.subr.mxu0 %v666_v1 }
  0x29   :  { %494 = vmatpush3.msra.mxu1 %v667_v9  ;;  %459 = vmatpush3.msra.mxu0 %v667_v9 }
  0x2a   :  { %495 = vmatprep.subr.mxu1 %v666_v1  ;;  %460 = vmatprep.subr.mxu0 %v666_v1 }
  0x2b   :  { %496 = vmatpush3.msra.mxu1 %v667_v9  ;;  %461 = vmatpush3.msra.mxu0 %v667_v9 }
  0x2c   :  { %497 = vmatprep.subr.mxu1 %v666_v1  ;;  %462 = vmatprep.subr.mxu0 %v666_v1 }
  0x2d   :  { %498 = vmatpush3.msra.mxu1 %v667_v9  ;;  %463 = vmatpush3.msra.mxu0 %v667_v9 }
  0x2e   :  { %499 = vmatprep.subr.mxu1 %v666_v1  ;;  %464 = vmatprep.subr.mxu0 %v666_v1 }
  0x2f   :  { %500 = vmatpush3.msra.mxu1 %v667_v9  ;;  %465 = vmatpush3.msra.mxu0 %v667_v9 }
  0x30   :  { %501 = vmatprep.subr.mxu1 %v666_v1  ;;  %466 = vmatprep.subr.mxu0 %v666_v1 }
  0x31   :  { %502 = vmatpush3.msra.mxu1 %v667_v9  ;;  %467 = vmatpush3.msra.mxu0 %v667_v9 }
  0x32   :  { %503 = vmatprep.subr.mxu1 %v666_v1  ;;  %468 = vmatprep.subr.mxu0 %v666_v1 }
  0x33   :  { %504 = vmatpush3.msra.mxu1 %v667_v9  ;;  %469 = vmatpush3.msra.mxu0 %v667_v9 }
  0x34   :  { %505 = vmatprep.subr.mxu1 %v666_v1  ;;  %470 = vmatprep.subr.mxu0 %v666_v1 }
  0x35   :  { %506 = vmatpush3.msra.mxu1 %v667_v9  ;;  %471 = vmatpush3.msra.mxu0 %v667_v9 }
  0x36   :  { %507 = vmatprep.subr.mxu1 %v666_v1  ;;  %472 = vmatprep.subr.mxu0 %v666_v1 }
  0x37   :  { %508 = vmatpush3.msra.mxu1 %v667_v9  ;;  %473 = vmatpush3.msra.mxu0 %v667_v9 }
  0x38   :  { %509 = vmatprep.subr.mxu1 %v666_v1  ;;  %474 = vmatprep.subr.mxu0 %v666_v1 }
  0x39   :  { %510 = vmatpush3.msra.mxu1 %v667_v9  ;;  %475 = vmatpush3.msra.mxu0 %v667_v9 }
  0x3a   :  { %511 = vmatprep.subr.mxu1 %v666_v1  ;;  %476 = vmatprep.subr.mxu0 %v666_v1 }
  0x3b   :  { %512 = vmatpush3.msra.mxu1 %v667_v9  ;;  %477 = vmatpush3.msra.mxu0 %v667_v9 }
  0x3c   :  { %516 = vmatprep.subr.mxu0 %v666_v1  ;;  %513 = vmatprep.mubr.msk.f32.mxu1 %vm668_vm1, %v666_v1 }
  0x3d   :  { %478 = vmatprep.mubr.msk.f32.mxu0 %vm668_vm1, %v666_v1 }
  0xa9   :  { %v71_v10 = vpop.xlane.xlu0 %70 }
  0xaa   :  { %v72_v11 = vsub.f32 %v706_v7, %v71_v10 }
  0xac   :  { %v76_v12 = vmul.f32 1.442695, %v72_v11 }
  0xad   :  { %v74_v13 = vpop.xlane.xlu0 %73 }
  0xae   :  { %562 = vpow2.f32 %v76_v12  ;;  %v75_v14 = vsub.f32 %v711_v8, %v74_v13 }
  0xb0   :  { %v78_v15 = vmul.f32 1.442695, %v75_v14 }
  0xb2   :  { %564 = vpow2.f32 %v78_v15 }
  0xbb   :  { %v563_v16 = vpop.eup %562 }
  0xbc   :  { %80 = vadd.xlane.f32.xlu1 %v563_v16 }
  0xbf   :  { %v565_v17 = vpop.eup %564 }
  0xc0   :  { %84 = vadd.xlane.f32.xlu1 %v565_v17 }
 0x145   :  { %v81_v18 = vpop.xlane.xlu1 %80 }
 0x146   :  { %566 = vrcp.f32 %v81_v18 }
 0x149   :  { %v85_v19 = vpop.xlane.xlu1 %84 }
 0x14a   :  { %568 = vrcp.f32 %v85_v19 }
 0x153   :  { %v567_v20 = vpop.eup %566 }
 0x154   :  { %v88_v22 = vmul.f32 %v567_v20, %v563_v16 }
 0x156   :  { %v90_v23 = vsub.f32 %v88_v22, %v69_v21 }
 0x157   :  { %v569_v24 = vpop.eup %568 }
 0x158   :  { %v93_v25 = vmul.f32 %v90_v23, %v90_v23  ;;  %v89_v26 = vmul.f32 %v569_v24, %v565_v17  ;;  %342 = vst [vmem:[#allocation7] sm:$0xff] %v90_v23 }
 0x15a   :  { %514 = vmatmul.mubr.f32.vlgmr.msra.gmra.mxu1 %v93_v25  ;;  %v91_v27 = vsub.f32 %v89_v26, %v69_v21  ;;  %357 = vst [vmem:[#allocation7 + $0x18] sm:$0xff] %v93_v25 }
 0x15c   :  { %v92_v28 = vmul.f32 %v91_v27, %v90_v23  ;;  %v94_v29 = vmul.f32 %v91_v27, %v91_v27  ;;  %347 = vst [vmem:[#allocation7 + $0x8] sm:$0xff] %v91_v27 }
 0x15e   :  { %479 = vmatmul.mubr.f32.vlgmr.msra.gmra.mxu0 %v92_v28  ;;  %352 = vst [vmem:[#allocation7 + $0x10] sm:$0xff] %v92_v28  ;;  %362 = vst [vmem:[#allocation7 + $0x20] sm:$0xff] %v94_v29 }
 0x15f   :  { %517 = vmatpush3.msra.mxu0 %v667_v9  ;;  %548 = vmatprep.mubr.msk.f32.mxu0 %vm668_vm1, %v666_v1 }
 0x160   :  { %518 = vmatprep.subr.mxu0 %v666_v1 }
 0x161   :  { %519 = vmatpush3.msra.mxu0 %v667_v9 }
 0x162   :  { %520 = vmatprep.subr.mxu0 %v666_v1 }
 0x163   :  { %521 = vmatpush3.msra.mxu0 %v667_v9 }
 0x164   :  { %522 = vmatprep.subr.mxu0 %v666_v1 }
 0x165   :  { %523 = vmatpush3.msra.mxu0 %v667_v9 }
 0x166   :  { %524 = vmatprep.subr.mxu0 %v666_v1 }
 0x167   :  { %525 = vmatpush3.msra.mxu0 %v667_v9 }
 0x168   :  { %526 = vmatprep.subr.mxu0 %v666_v1 }
 0x169   :  { %527 = vmatpush3.msra.mxu0 %v667_v9 }
 0x16a   :  { %528 = vmatprep.subr.mxu0 %v666_v1 }
 0x16b   :  { %529 = vmatpush3.msra.mxu0 %v667_v9 }
 0x16c   :  { %530 = vmatprep.subr.mxu0 %v666_v1 }
 0x16d   :  { %531 = vmatpush3.msra.mxu0 %v667_v9 }
 0x16e   :  { %532 = vmatprep.subr.mxu0 %v666_v1 }
 0x16f   :  { %533 = vmatpush3.msra.mxu0 %v667_v9 }
 0x170   :  { %534 = vmatprep.subr.mxu0 %v666_v1 }
 0x171   :  { %535 = vmatpush3.msra.mxu0 %v667_v9 }
 0x172   :  { %536 = vmatprep.subr.mxu0 %v666_v1 }
 0x173   :  { %537 = vmatpush3.msra.mxu0 %v667_v9 }
 0x174   :  { %538 = vmatprep.subr.mxu0 %v666_v1 }
 0x175   :  { %539 = vmatpush3.msra.mxu0 %v667_v9 }
 0x176   :  { %540 = vmatprep.subr.mxu0 %v666_v1 }
 0x177   :  { %541 = vmatpush3.msra.mxu0 %v667_v9 }
 0x178   :  { %542 = vmatprep.subr.mxu0 %v666_v1 }
 0x179   :  { %543 = vmatpush3.msra.mxu0 %v667_v9 }
 0x17a   :  { %544 = vmatprep.subr.mxu0 %v666_v1 }
 0x17b   :  { %545 = vmatpush3.msra.mxu0 %v667_v9 }
 0x17c   :  { %546 = vmatprep.subr.mxu0 %v666_v1 }
 0x17d   :  { %547 = vmatpush3.msra.mxu0 %v667_v9 }
 0x17e   :  { %549 = vmatmul.mubr.f32.vlgmr.msra.gmra.mxu0 %v94_v29 }
 0x21a   :  { %v231_v30 = vpop.f32.mrf.mxu1 }
 0x21b   :  { %570 = vrsqrt.f32 %v231_v30  ;;  %vm237_vm2 = vcmp.eq.f32.partialorder %v231_v30, inf  ;;  %v240_v41 = vand.u32 2147483648, %v231_v30  ;;  %vm239_vm4 = vcmp.eq.f32.partialorder %v231_v30, 0.0 }
 0x21c   :  { %v515_v31 = vpop.f32.mrf.mxu1 }
 0x21e   :  { %v161_v32 = vpop.f32.mrf.mxu0 }
 0x220   :  { %v480_v33 = vpop.f32.mrf.mxu0 }
 0x228   :  { %v571_v36 = vpop.eup %570 }
 0x229   :  { %v236_v37 = vmul.f32 %v571_v36, %v231_v30 }
 0x22b   :  { %v238_v39 = vsel %vm237_vm2, %v231_v30, %v236_v37 }
 0x22c   :  { %v241_v44 = vsel %vm239_vm4, %v240_v41, %v238_v39 }
 0x23e   :  { %v308_v34 = vpop.f32.mrf.mxu0 }
 0x23f   :  { %572 = vrsqrt.f32 %v308_v34  ;;  %vm314_vm3 = vcmp.eq.f32.partialorder %v308_v34, inf  ;;  %v317_v42 = vand.u32 2147483648, %v308_v34  ;;  %vm316_vm5 = vcmp.eq.f32.partialorder %v308_v34, 0.0 }
 0x240   :  { %v550_v35 = vpop.f32.mrf.mxu0 }
 0x24c   :  { %v573_v38 = vpop.eup %572 }
 0x24d   :  { %v313_v40 = vmul.f32 %v573_v38, %v308_v34 }
 0x24f   :  { %v315_v43 = vsel %vm314_vm3, %v308_v34, %v313_v40 }
 0x250   :  { %v318_v45 = vsel %vm316_vm5, %v317_v42, %v315_v43 }
 0x251   :  { %v319_v46 = vmul.f32 %v318_v45, %v241_v44 }
 0x253   :  { %v320_v47 = vadd.f32 1e-08, %v319_v46 }
 0x255   :  { %574 = vrcp.f32 %v320_v47 }
 0x262   :  { %v575_v48 = vpop.eup %574 }
 0x263   :  { %v323_v49 = vmul.f32 %v575_v48, %v161_v32 }
 0x265   :  { %v325_v50 = vsel %vm324_vm6, %v323_v49, 0.0 }
 0x266   :  { %326 = vadd.xlane.f32.xlu0 %v325_v50 }
 0x267   :  { %627 = shalt.err (!%p624_p0)
}
 0x268   :  { %s670_s23 = smov 128   ;;  %s671_s24 = smov 8   ;;  %v321_v58 = vld [vmem:[#allocation8] sm:$0x1] }
 0x269   :  { %374 = dma.vmem_to_hbm [thread:$0]  %s369_s1, 640, %s830_s2, [#allocation4], %s670_s23, %s670_s23, %s671_s24  }
 0x26a   :  { %s672_s27 = smov [#allocation8]  }
 0x26b   :  { %s381_s28 = sshll.u32 %s672_s27, 4  ;;  %s382_s28 = int_to_ptr.vmem [resolvable:$true] %s381_s28 }
 0x26c   :  { %s636_s30 = scalar_lea.vmem %s382_s28, 16  ;;  %s640_s2 = scalar_lea.vmem %s382_s28, 32 }
 0x26d   :  { %p637_p1 = scmp.ne.s32.totalorder %s382_s28, %s636_s30  ;;  %p641_p2 = scmp.lt.s32.totalorder %s382_s28, %s382_s28 }
 0x26e   :  { %p642_p3 = scmp.lt.s32.totalorder %s640_s2, %s636_s30 }
 0x270   :  { %p643_p4 = por %p642_p3, %p641_p2 }
 0x272   :  { %p644_p5 = pnand %p643_p4, %p637_p1 }
 0x2ef   :  { %v327_v51 = vpop.xlane.xlu0 %326 }
 0x2f0   :  { %v328_v52 = vrot.slane %v327_v51, 4 }
 0x2f2   :  { %v329_v53 = vadd.f32 %v328_v52, %v327_v51 }
 0x2f4   :  { %v330_v54 = vrot.slane %v329_v53, 2 }
 0x2f6   :  { %v331_v55 = vadd.f32 %v330_v54, %v329_v53 }
 0x2f8   :  { %v332_v56 = vrot.slane %v331_v55, 1 }
 0x2fa   :  { %v333_v57 = vadd.f32 %v332_v56, %v331_v55 }
 0x2fc   :  { %551 = vpush %v333_v57 }
 0x32d   :  { %s552_s29 = spop %551 }
 0x32e   :  { %v335_v59 = vstv %s552_s29 }
 0x32f   :  { %v336_v60 = vadd.f32 %v335_v59, %v321_v58 }
 0x331   :  { %338 = vst.msk [vmem:[#allocation8] sm:$0x1] %vm56_vm7, %v336_v60 }
 0x332   :  { %647 = shalt.err (!%p644_p5)
}
 0x333   :  { %384 = dma.vmem_to_hbm [thread:$0]  %s382_s28, 16, %s831_s3, [#allocation9]  }
 0x334   :  { %660 = dma.done.wait [#allocation4], 640  }
 0x335   :  { %661 = vsyncadd [#allocation4], 4294966656 }
 0x336   :  { %662 = dma.done.wait [#allocation9], 16  }
 0x337   :  { %663 = vsyncadd [#allocation9], 4294967280 }
 0x338   :  { %391 = vsyncpa [#allocation3], 1 }
 0x339   :  { %392 = vsyncpa [#allocation6], 1 }
 0x33a   :  { %393 = vsyncpa [#allocation4], 1 }
 0x33b   :  { %394 = vsyncpa [#allocation9], 1 }

</bundles_post_ra>
